<compile_context>
chip_gen: v6e
topology: v6e:2x2x1
jax: 0.10.0
libtpu: 0.0.40
codegen_flags: <defaults>
</compile_context>

<pallas_src>
import functools

import numpy as np
import jax
import jax.numpy as jnp
from jax.experimental import pallas as pl
from jax.experimental.pallas import tpu as pltpu

EPS = 1e-5           # nn.BatchNorm1d default eps
LEAKY_SLOPE = 0.01   # nn.LeakyReLU default negative_slope


def _round_up(x, m):
    return ((x + m - 1) // m) * m


# ----------------------------- Pallas kernel -------------------------------

def _dfcnn_fused_kernel(*refs, layers):
    """Fused forward pass for one batch tile.

    refs = (x_ref, w0, off0, w1, off1, ..., wN, offN, out_ref)
    layers = tuple of (act, pool) per layer; weights carry the folded BN scale,
    offsets are f32.  Pre-pool layers have phase-grouped output columns, so
    MaxPool1d is an elementwise max over `pool` contiguous lane slices whose
    result is already the compact channel-major layout of the next layer.
    """
    x_ref, out_ref = refs[0], refs[-1]
    param_refs = refs[1:-1]

    h = x_ref[...]                                     # (TB, F0) f32
    for li, (act, pool) in enumerate(layers):
        w = param_refs[2 * li][...]                    # (Fin, Fout)
        off = param_refs[2 * li + 1][...]              # (1, Fout)  f32
        y = jnp.dot(h.astype(w.dtype), w,
                    preferred_element_type=jnp.float32)
        y = y + off                                    # folded bias + BN shift
        if act == "relu":
            y = jnp.maximum(y, 0.0)
        elif act == "leaky_relu":
            y = jnp.maximum(y, LEAKY_SLOPE * y)        # 2 VALU ops, not 3
        if pool > 1:
            # Phase-grouped columns: phase m lives in lanes [m*G, (m+1)*G).
            g = y.shape[1] // pool
            z = y[:, :g]
            for m in range(1, pool):
                z = jnp.maximum(z, y[:, m * g:(m + 1) * g])
            y = z                                      # compact channel-major
        h = y
    out_ref[...] = h                                   # lane-dense (TB, 128)


def make_dfcnn_forward(layer_meta, nclass, in_cols, out_cols, block_rows=256):
    kernel = functools.partial(_dfcnn_fused_kernel, layers=tuple(layer_meta))

    @jax.jit
    def forward(x, params):
        b = x.shape[0]
        h = x.reshape(b, -1).astype(jnp.float32)   # channel-major flatten
        # Row-pad to a full sublane-packed tile and tile the batch dimension.
        # Weights use constant index_maps (VMEM-resident across blocks); the
        # batch axis is "parallel" so v7x spreads blocks over both TCs.
        tb = min(block_rows, _round_up(b, 16))
        b_pad = _round_up(b, tb)
        if b_pad != b:
            h = jnp.pad(h, ((0, b_pad - b), (0, 0)))
        in_specs = [pl.BlockSpec((tb, in_cols), lambda i: (i, 0))]
        for prm in params:
            in_specs.append(pl.BlockSpec(prm.shape, lambda i: (0, 0)))
        out = pl.pallas_call(
            kernel,
            out_shape=jax.ShapeDtypeStruct((b_pad, out_cols), jnp.float32),
            grid=(b_pad // tb,),
            in_specs=in_specs,
            out_specs=pl.BlockSpec((tb, out_cols), lambda i: (i, 0)),
            compiler_params=pltpu.CompilerParams(
                dimension_semantics=("parallel",)),
        )(h, *params)
        return out[:b, :nclass]

    return forward


# ------------------------ parameter setup (glue) ---------------------------

def init_conv_params(rng, cin, cout, k):
    bound = 1.0 / np.sqrt(cin * k)
    return dict(
        w=rng.uniform(-bound, bound, (cout, cin, k)).astype(np.float32),
        b=rng.uniform(-bound, bound, (cout,)).astype(np.float32),
        gamma=rng.uniform(0.5, 1.5, (cout,)).astype(np.float32),
        beta=rng.uniform(-0.3, 0.3, (cout,)).astype(np.float32),
        mean=rng.uniform(-0.3, 0.3, (cout,)).astype(np.float32),
        var=rng.uniform(0.5, 1.5, (cout,)).astype(np.float32),
    )


def init_linear_params(rng, fin, fout):
    bound = 1.0 / np.sqrt(fin)
    return dict(
        w=rng.uniform(-bound, bound, (fout, fin)).astype(np.float32),
        b=rng.uniform(-bound, bound, (fout,)).astype(np.float32),
        gamma=rng.uniform(0.5, 1.5, (fout,)).astype(np.float32),
        beta=rng.uniform(-0.3, 0.3, (fout,)).astype(np.float32),
        mean=rng.uniform(-0.3, 0.3, (fout,)).astype(np.float32),
        var=rng.uniform(0.5, 1.5, (fout,)).astype(np.float32),
    )


def build_conv_layer(p, dilation, L, pool):
    """Circulant for Conv1d('same', circular) with BN scale folded in.

    If pool > 1, output columns are grouped by pooling phase so the in-kernel
    MaxPool1d is a max over `pool` contiguous lane slices whose result is the
    compact channel-major layout of the next layer.
    """
    w, b = p["w"], p["b"]
    cout, cin, k = w.shape
    left = (dilation * (k - 1)) // 2     # PyTorch 'same' split: left = total//2
    sc = p["gamma"] / np.sqrt(p["var"] + EPS)
    off_c = (b - p["mean"]) * sc + p["beta"]
    Lout = L // pool
    ncols = cout * Lout * pool

    def col(c, l):
        if pool == 1:
            return c * L + l
        j, m = l // pool, l % pool
        return m * (cout * Lout) + c * Lout + j

    M = np.zeros((cin * L, ncols), np.float32)
    for co in range(cout):
        for ci in range(cin):
            for kk in range(k):
                for l in range(Lout * pool):
                    lin = (l + kk * dilation - left) % L
                    M[ci * L + lin, col(co, l)] += w[co, ci, kk] * sc[co]

    if pool == 1:
        offset = np.repeat(off_c, L)
    else:
        offset = np.tile(np.repeat(off_c, Lout), pool)
    return M.astype(np.float32), offset.reshape(1, -1).astype(np.float32)


def build_linear_layer(p, with_bn, pad_in_to=None, pad_out_to=None):
    """Linear(+BatchNorm) with BN scale folded in; zero-padded to lane-dense
    widths (extra columns/rows are exact zeros -> identical math)."""
    W = np.ascontiguousarray(p["w"].T).astype(np.float32)   # (in, out)
    if with_bn:
        sc = (p["gamma"] / np.sqrt(p["var"] + EPS)).astype(np.float32)
        W = W * sc[None, :]
        off = (p["b"] - p["mean"]) * sc + p["beta"]
    else:
        off = p["b"].astype(np.float32)
    fin, fout = W.shape
    pin = pad_in_to if (pad_in_to and pad_in_to > fin) else fin
    pout = pad_out_to if (pad_out_to and pad_out_to > fout) else fout
    Wp = np.zeros((pin, pout), np.float32)
    Wp[:fin, :fout] = W
    offp = np.zeros((pout,), np.float32)
    offp[:fout] = off
    return Wp, offp.reshape(1, -1).astype(np.float32)


# --------------------------- numpy reference --------------------------------

def ref_forward(x, conv_specs, linear_params, out_params):
    h = np.asarray(x, dtype=np.float64)
    for (p, d, pool) in conv_specs:
        w, b = p["w"].astype(np.float64), p["b"].astype(np.float64)
        Bn, Cin, L = h.shape
        Cout, _, K = w.shape
        total = d * (K - 1)
        left = total // 2
        right = total - left
        # TODO(synk): even-kernel (k=4) 'same'/circular split assumed to match
        # torch (left = total//2); spot-check vs torch.nn.Conv1d offline.
        xp = np.concatenate([h[..., L - left:], h, h[..., :right]], axis=-1)
        out = np.zeros((Bn, Cout, L))
        for l in range(L):
            for kk in range(K):
                out[:, :, l] += xp[:, :, l + kk * d] @ w[:, :, kk].T
        out += b[None, :, None]
        out = ((out - p["mean"][None, :, None])
               / np.sqrt(p["var"][None, :, None] + EPS)
               * p["gamma"][None, :, None] + p["beta"][None, :, None])
        out = np.maximum(out, 0.0)
        if pool > 1:
            Lout = L // pool
            out = out[:, :, :Lout * pool].reshape(Bn, Cout, Lout, pool).max(-1)
        h = out
    h = h.reshape(h.shape[0], -1)
    for p in linear_params:
        y = h @ p["w"].T.astype(np.float64) + p["b"]
        y = (y - p["mean"]) / np.sqrt(p["var"] + EPS) * p["gamma"] + p["beta"]
        y = np.where(y >= 0.0, y, LEAKY_SLOPE * y)
        h = y
        # TODO(synk): nn.Dropout is identity in eval/inference mode; the
        # training-mode stochastic dropout (and batch-stat BatchNorm) is not
        # implemented here.
    return h @ out_params["w"].T.astype(np.float64) + out_params["b"]


# --------------------------------- main -------------------------------------

if __name__ == "__main__":
    rng = np.random.RandomState(0)
    key = jax.random.PRNGKey(0)

    NCLASS = 3
    NINPUT_CH = 4
    L_IN = 16
    B = 2
    HID_PAD = 128   # hidden linear widths padded lane-dense
    OUT_PAD = 128   # lane-dense final store; logits sliced to NCLASS outside
    # conv_list entries: (in_f list, out_f list, kernel list, dilation list, maxpool)
    CONV_LIST = [
        ([NINPUT_CH, 8], [8, 8], [3, 3], [1, 2], 2),
        ([8, 16], [16, 16], [3, 4], [2, 1], 2),
    ]
    # linear_list = (in_f list, out_f list, pdrop list)
    LINEAR_LIST = ([64, 32], [32, 32], [0.1, 0.1])

    np_layers = []   # (M, offset) per layer, numpy f32
    layer_meta = []  # (act, pool) per layer
    conv_specs = []  # raw params for the independent numpy reference
    L = L_IN
    for (in_fs, out_fs, ks, ds, mk) in CONV_LIST:
        n = len(in_fs)
        for i, (cin, cout, kk, dd) in enumerate(zip(in_fs, out_fs, ks, ds)):
            p = init_conv_params(rng, cin, cout, kk)
            pool = mk if i == n - 1 else 1
            M, offset = build_conv_layer(p, dd, L, pool)
            np_layers.append((M, offset))
            layer_meta.append(("relu", pool))
            conv_specs.append((p, dd, pool))
            if pool > 1:
                L //= pool

    lin_in, lin_out, _pdrop = LINEAR_LIST
    linear_params = []
    for li, (fi, fo) in enumerate(zip(lin_in, lin_out)):
        p = init_linear_params(rng, fi, fo)
        pad_in = HID_PAD if li > 0 else None   # first linear's input is the conv flatten
        W, off = build_linear_layer(p, with_bn=True,
                                    pad_in_to=pad_in, pad_out_to=HID_PAD)
        np_layers.append((W, off))
        layer_meta.append(("leaky_relu", 1))
        linear_params.append(p)
    p_out = init_linear_params(rng, lin_out[-1], NCLASS)
    Wo, oo = build_linear_layer(p_out, with_bn=False,
                                pad_in_to=HID_PAD, pad_out_to=OUT_PAD)
    np_layers.append((Wo, oo))
    layer_meta.append((None, 1))

    # Weights converted to device arrays ONCE; bf16 (MXU-native) for production,
    # plus an f32-weight debug copy to isolate layout bugs from quantization.
    params_bf16 = tuple(a for M, off in np_layers
                        for a in (jnp.asarray(M, dtype=jnp.bfloat16),
                                  jnp.asarray(off)))
    params_f32 = tuple(a for M, off in np_layers
                       for a in (jnp.asarray(M), jnp.asarray(off)))

    forward = make_dfcnn_forward(layer_meta, NCLASS,
                                 in_cols=NINPUT_CH * L_IN, out_cols=OUT_PAD)

    x = jax.random.normal(key, (B, NINPUT_CH, L_IN), dtype=jnp.float32)
    ref = ref_forward(np.asarray(x), conv_specs, linear_params, p_out)

    # f32-weight debug path: validates layout/indexing independent of bf16
    # weight quantization (tolerance still covers MXU f32-pass rounding).
    out_dbg = jax.block_until_ready(forward(x, params_f32))
    assert out_dbg.shape == (B, NCLASS)
    np.testing.assert_allclose(np.asarray(out_dbg), ref, rtol=1e-2, atol=1e-2)

    # Production bf16-weight path.
    out = jax.block_until_ready(forward(x, params_bf16))
    assert out.shape == (B, NCLASS)
    np.testing.assert_allclose(np.asarray(out), ref, rtol=2e-2, atol=2e-2)
    print("KERNEL_OK")
</pallas_src>

<mosaic_0001>
module attributes {stable_mosaic.version = 11 : i64} {
  func.func @_dfcnn_fused_kernel(%arg0: i32, %arg1: memref<16x64xf32, #tpu.memory_space<vmem>>, %arg2: memref<64x128xf32, #tpu.memory_space<vmem>>, %arg3: memref<1x128xf32, #tpu.memory_space<vmem>>, %arg4: memref<128x128xf32, #tpu.memory_space<vmem>>, %arg5: memref<1x128xf32, #tpu.memory_space<vmem>>, %arg6: memref<64x128xf32, #tpu.memory_space<vmem>>, %arg7: memref<1x128xf32, #tpu.memory_space<vmem>>, %arg8: memref<128x128xf32, #tpu.memory_space<vmem>>, %arg9: memref<1x128xf32, #tpu.memory_space<vmem>>, %arg10: memref<64x128xf32, #tpu.memory_space<vmem>>, %arg11: memref<1x128xf32, #tpu.memory_space<vmem>>, %arg12: memref<128x128xf32, #tpu.memory_space<vmem>>, %arg13: memref<1x128xf32, #tpu.memory_space<vmem>>, %arg14: memref<128x128xf32, #tpu.memory_space<vmem>>, %arg15: memref<1x128xf32, #tpu.memory_space<vmem>>, %arg16: memref<16x128xf32, #tpu.memory_space<vmem>>) attributes {dimension_semantics = [#tpu.dimension_semantics<parallel>], iteration_bounds = array<i64: 1>, scalar_prefetch = 0 : i64, scratch_operands = 0 : i64, tpu.core_type = #tpu.core_type<tc>, window_params = [{transform_indices = @transform_0, window_bounds = array<i64: 16, 64>}, {pipeline_mode = #tpu.pipeline_mode<synchronous>, transform_indices = @transform_1, window_bounds = array<i64: 64, 128>}, {pipeline_mode = #tpu.pipeline_mode<synchronous>, transform_indices = @transform_2, window_bounds = array<i64: 1, 128>}, {pipeline_mode = #tpu.pipeline_mode<synchronous>, transform_indices = @transform_3, window_bounds = array<i64: 128, 128>}, {pipeline_mode = #tpu.pipeline_mode<synchronous>, transform_indices = @transform_4, window_bounds = array<i64: 1, 128>}, {pipeline_mode = #tpu.pipeline_mode<synchronous>, transform_indices = @transform_5, window_bounds = array<i64: 64, 128>}, {pipeline_mode = #tpu.pipeline_mode<synchronous>, transform_indices = @transform_6, window_bounds = array<i64: 1, 128>}, {pipeline_mode = #tpu.pipeline_mode<synchronous>, transform_indices = @transform_7, window_bounds = array<i64: 128, 128>}, {pipeline_mode = #tpu.pipeline_mode<synchronous>, transform_indices = @transform_8, window_bounds = array<i64: 1, 128>}, {pipeline_mode = #tpu.pipeline_mode<synchronous>, transform_indices = @transform_9, window_bounds = array<i64: 64, 128>}, {pipeline_mode = #tpu.pipeline_mode<synchronous>, transform_indices = @transform_10, window_bounds = array<i64: 1, 128>}, {pipeline_mode = #tpu.pipeline_mode<synchronous>, transform_indices = @transform_11, window_bounds = array<i64: 128, 128>}, {pipeline_mode = #tpu.pipeline_mode<synchronous>, transform_indices = @transform_12, window_bounds = array<i64: 1, 128>}, {pipeline_mode = #tpu.pipeline_mode<synchronous>, transform_indices = @transform_13, window_bounds = array<i64: 128, 128>}, {pipeline_mode = #tpu.pipeline_mode<synchronous>, transform_indices = @transform_14, window_bounds = array<i64: 1, 128>}, {transform_indices = @transform_15, window_bounds = array<i64: 16, 128>}]} {
    %c0 = arith.constant 0 : index
    %c0_0 = arith.constant 0 : index
    %0 = vector.load %arg1[%c0, %c0_0] : memref<16x64xf32, #tpu.memory_space<vmem>>, vector<16x64xf32>
    %c0_1 = arith.constant 0 : index
    %c0_2 = arith.constant 0 : index
    %1 = vector.load %arg2[%c0_1, %c0_2] : memref<64x128xf32, #tpu.memory_space<vmem>>, vector<64x128xf32>
    %c0_3 = arith.constant 0 : index
    %c0_4 = arith.constant 0 : index
    %2 = vector.load %arg3[%c0_3, %c0_4] : memref<1x128xf32, #tpu.memory_space<vmem>>, vector<1x128xf32>
    %cst = arith.constant dense<0.000000e+00> : vector<16x128xf32>
    %3 = tpu.matmul %0, %1, %cst {dimension_numbers = #tpu.dot_dimension_numbers<[1], [0], [0], [1], [0, 0, 1, 1], [], []>} : vector<16x64xf32>, vector<64x128xf32>, vector<16x128xf32> -> vector<16x128xf32>
    %4 = vector.broadcast %2 : vector<1x128xf32> to vector<16x128xf32>
    %5 = arith.addf %3, %4 : vector<16x128xf32>
    %cst_5 = arith.constant 0.000000e+00 : f32
    %6 = vector.broadcast %cst_5 : f32 to vector<16x128xf32>
    %7 = arith.maximumf %5, %6 : vector<16x128xf32>
    %c0_6 = arith.constant 0 : index
    %c0_7 = arith.constant 0 : index
    %8 = vector.load %arg4[%c0_6, %c0_7] : memref<128x128xf32, #tpu.memory_space<vmem>>, vector<128x128xf32>
    %c0_8 = arith.constant 0 : index
    %c0_9 = arith.constant 0 : index
    %9 = vector.load %arg5[%c0_8, %c0_9] : memref<1x128xf32, #tpu.memory_space<vmem>>, vector<1x128xf32>
    %cst_10 = arith.constant dense<0.000000e+00> : vector<16x128xf32>
    %10 = tpu.matmul %7, %8, %cst_10 {dimension_numbers = #tpu.dot_dimension_numbers<[1], [0], [0], [1], [0, 0, 1, 1], [], []>} : vector<16x128xf32>, vector<128x128xf32>, vector<16x128xf32> -> vector<16x128xf32>
    %11 = vector.broadcast %9 : vector<1x128xf32> to vector<16x128xf32>
    %12 = arith.addf %10, %11 : vector<16x128xf32>
    %cst_11 = arith.constant 0.000000e+00 : f32
    %13 = vector.broadcast %cst_11 : f32 to vector<16x128xf32>
    %14 = arith.maximumf %12, %13 : vector<16x128xf32>
    %15 = vector.extract_strided_slice %14 {offsets = [0, 0], sizes = [16, 64], strides = [1, 1]} : vector<16x128xf32> to vector<16x64xf32>
    %16 = vector.extract_strided_slice %14 {offsets = [0, 64], sizes = [16, 64], strides = [1, 1]} : vector<16x128xf32> to vector<16x64xf32>
    %17 = arith.maximumf %15, %16 : vector<16x64xf32>
    %c0_12 = arith.constant 0 : index
    %c0_13 = arith.constant 0 : index
    %18 = vector.load %arg6[%c0_12, %c0_13] : memref<64x128xf32, #tpu.memory_space<vmem>>, vector<64x128xf32>
    %c0_14 = arith.constant 0 : index
    %c0_15 = arith.constant 0 : index
    %19 = vector.load %arg7[%c0_14, %c0_15] : memref<1x128xf32, #tpu.memory_space<vmem>>, vector<1x128xf32>
    %cst_16 = arith.constant dense<0.000000e+00> : vector<16x128xf32>
    %20 = tpu.matmul %17, %18, %cst_16 {dimension_numbers = #tpu.dot_dimension_numbers<[1], [0], [0], [1], [0, 0, 1, 1], [], []>} : vector<16x64xf32>, vector<64x128xf32>, vector<16x128xf32> -> vector<16x128xf32>
    %21 = vector.broadcast %19 : vector<1x128xf32> to vector<16x128xf32>
    %22 = arith.addf %20, %21 : vector<16x128xf32>
    %cst_17 = arith.constant 0.000000e+00 : f32
    %23 = vector.broadcast %cst_17 : f32 to vector<16x128xf32>
    %24 = arith.maximumf %22, %23 : vector<16x128xf32>
    %c0_18 = arith.constant 0 : index
    %c0_19 = arith.constant 0 : index
    %25 = vector.load %arg8[%c0_18, %c0_19] : memref<128x128xf32, #tpu.memory_space<vmem>>, vector<128x128xf32>
    %c0_20 = arith.constant 0 : index
    %c0_21 = arith.constant 0 : index
    %26 = vector.load %arg9[%c0_20, %c0_21] : memref<1x128xf32, #tpu.memory_space<vmem>>, vector<1x128xf32>
    %cst_22 = arith.constant dense<0.000000e+00> : vector<16x128xf32>
    %27 = tpu.matmul %24, %25, %cst_22 {dimension_numbers = #tpu.dot_dimension_numbers<[1], [0], [0], [1], [0, 0, 1, 1], [], []>} : vector<16x128xf32>, vector<128x128xf32>, vector<16x128xf32> -> vector<16x128xf32>
    %28 = vector.broadcast %26 : vector<1x128xf32> to vector<16x128xf32>
    %29 = arith.addf %27, %28 : vector<16x128xf32>
    %cst_23 = arith.constant 0.000000e+00 : f32
    %30 = vector.broadcast %cst_23 : f32 to vector<16x128xf32>
    %31 = arith.maximumf %29, %30 : vector<16x128xf32>
    %32 = vector.extract_strided_slice %31 {offsets = [0, 0], sizes = [16, 64], strides = [1, 1]} : vector<16x128xf32> to vector<16x64xf32>
    %33 = vector.extract_strided_slice %31 {offsets = [0, 64], sizes = [16, 64], strides = [1, 1]} : vector<16x128xf32> to vector<16x64xf32>
    %34 = arith.maximumf %32, %33 : vector<16x64xf32>
    %c0_24 = arith.constant 0 : index
    %c0_25 = arith.constant 0 : index
    %35 = vector.load %arg10[%c0_24, %c0_25] : memref<64x128xf32, #tpu.memory_space<vmem>>, vector<64x128xf32>
    %c0_26 = arith.constant 0 : index
    %c0_27 = arith.constant 0 : index
    %36 = vector.load %arg11[%c0_26, %c0_27] : memref<1x128xf32, #tpu.memory_space<vmem>>, vector<1x128xf32>
    %cst_28 = arith.constant dense<0.000000e+00> : vector<16x128xf32>
    %37 = tpu.matmul %34, %35, %cst_28 {dimension_numbers = #tpu.dot_dimension_numbers<[1], [0], [0], [1], [0, 0, 1, 1], [], []>} : vector<16x64xf32>, vector<64x128xf32>, vector<16x128xf32> -> vector<16x128xf32>
    %38 = vector.broadcast %36 : vector<1x128xf32> to vector<16x128xf32>
    %39 = arith.addf %37, %38 : vector<16x128xf32>
    %cst_29 = arith.constant 0.00999999977 : f32
    %40 = vector.broadcast %cst_29 : f32 to vector<16x128xf32>
    %41 = arith.mulf %40, %39 : vector<16x128xf32>
    %42 = arith.maximumf %39, %41 : vector<16x128xf32>
    %c0_30 = arith.constant 0 : index
    %c0_31 = arith.constant 0 : index
    %43 = vector.load %arg12[%c0_30, %c0_31] : memref<128x128xf32, #tpu.memory_space<vmem>>, vector<128x128xf32>
    %c0_32 = arith.constant 0 : index
    %c0_33 = arith.constant 0 : index
    %44 = vector.load %arg13[%c0_32, %c0_33] : memref<1x128xf32, #tpu.memory_space<vmem>>, vector<1x128xf32>
    %cst_34 = arith.constant dense<0.000000e+00> : vector<16x128xf32>
    %45 = tpu.matmul %42, %43, %cst_34 {dimension_numbers = #tpu.dot_dimension_numbers<[1], [0], [0], [1], [0, 0, 1, 1], [], []>} : vector<16x128xf32>, vector<128x128xf32>, vector<16x128xf32> -> vector<16x128xf32>
    %46 = vector.broadcast %44 : vector<1x128xf32> to vector<16x128xf32>
    %47 = arith.addf %45, %46 : vector<16x128xf32>
    %cst_35 = arith.constant 0.00999999977 : f32
    %48 = vector.broadcast %cst_35 : f32 to vector<16x128xf32>
    %49 = arith.mulf %48, %47 : vector<16x128xf32>
    %50 = arith.maximumf %47, %49 : vector<16x128xf32>
    %c0_36 = arith.constant 0 : index
    %c0_37 = arith.constant 0 : index
    %51 = vector.load %arg14[%c0_36, %c0_37] : memref<128x128xf32, #tpu.memory_space<vmem>>, vector<128x128xf32>
    %c0_38 = arith.constant 0 : index
    %c0_39 = arith.constant 0 : index
    %52 = vector.load %arg15[%c0_38, %c0_39] : memref<1x128xf32, #tpu.memory_space<vmem>>, vector<1x128xf32>
    %cst_40 = arith.constant dense<0.000000e+00> : vector<16x128xf32>
    %53 = tpu.matmul %50, %51, %cst_40 {dimension_numbers = #tpu.dot_dimension_numbers<[1], [0], [0], [1], [0, 0, 1, 1], [], []>} : vector<16x128xf32>, vector<128x128xf32>, vector<16x128xf32> -> vector<16x128xf32>
    %54 = vector.broadcast %52 : vector<1x128xf32> to vector<16x128xf32>
    %55 = arith.addf %53, %54 : vector<16x128xf32>
    %c0_41 = arith.constant 0 : index
    %c0_42 = arith.constant 0 : index
    %56 = vector.load %arg16[%c0_41, %c0_42] : memref<16x128xf32, #tpu.memory_space<vmem>>, vector<16x128xf32>
    tpu.vector_store %arg16[%c0_41, %c0_42], %55 {strides = array<i32>} : memref<16x128xf32, #tpu.memory_space<vmem>>, vector<16x128xf32>,
    return
  }
  func.func @transform_0(%arg0: i32) -> (i32, i32) {
    %c0_i32 = arith.constant 0 : i32
    %c0_i32_0 = arith.constant 0 : i32
    return %arg0, %c0_i32 : i32, i32
  }
  func.func @transform_1(%arg0: i32) -> (i32, i32) {
    %c0_i32 = arith.constant 0 : i32
    %c0_i32_0 = arith.constant 0 : i32
    %c0_i32_1 = arith.constant 0 : i32
    return %c0_i32, %c0_i32_0 : i32, i32
  }
  func.func @transform_2(%arg0: i32) -> (i32, i32) {
    %c0_i32 = arith.constant 0 : i32
    %c0_i32_0 = arith.constant 0 : i32
    %c0_i32_1 = arith.constant 0 : i32
    return %c0_i32, %c0_i32_0 : i32, i32
  }
  func.func @transform_3(%arg0: i32) -> (i32, i32) {
    %c0_i32 = arith.constant 0 : i32
    %c0_i32_0 = arith.constant 0 : i32
    %c0_i32_1 = arith.constant 0 : i32
    return %c0_i32, %c0_i32_0 : i32, i32
  }
  func.func @transform_4(%arg0: i32) -> (i32, i32) {
    %c0_i32 = arith.constant 0 : i32
    %c0_i32_0 = arith.constant 0 : i32
    %c0_i32_1 = arith.constant 0 : i32
    return %c0_i32, %c0_i32_0 : i32, i32
  }
  func.func @transform_5(%arg0: i32) -> (i32, i32) {
    %c0_i32 = arith.constant 0 : i32
    %c0_i32_0 = arith.constant 0 : i32
    %c0_i32_1 = arith.constant 0 : i32
    return %c0_i32, %c0_i32_0 : i32, i32
  }
  func.func @transform_6(%arg0: i32) -> (i32, i32) {
    %c0_i32 = arith.constant 0 : i32
    %c0_i32_0 = arith.constant 0 : i32
    %c0_i32_1 = arith.constant 0 : i32
    return %c0_i32, %c0_i32_0 : i32, i32
  }
  func.func @transform_7(%arg0: i32) -> (i32, i32) {
    %c0_i32 = arith.constant 0 : i32
    %c0_i32_0 = arith.constant 0 : i32
    %c0_i32_1 = arith.constant 0 : i32
    return %c0_i32, %c0_i32_0 : i32, i32
  }
  func.func @transform_8(%arg0: i32) -> (i32, i32) {
    %c0_i32 = arith.constant 0 : i32
    %c0_i32_0 = arith.constant 0 : i32
    %c0_i32_1 = arith.constant 0 : i32
    return %c0_i32, %c0_i32_0 : i32, i32
  }
  func.func @transform_9(%arg0: i32) -> (i32, i32) {
    %c0_i32 = arith.constant 0 : i32
    %c0_i32_0 = arith.constant 0 : i32
    %c0_i32_1 = arith.constant 0 : i32
    return %c0_i32, %c0_i32_0 : i32, i32
  }
  func.func @transform_10(%arg0: i32) -> (i32, i32) {
    %c0_i32 = arith.constant 0 : i32
    %c0_i32_0 = arith.constant 0 : i32
    %c0_i32_1 = arith.constant 0 : i32
    return %c0_i32, %c0_i32_0 : i32, i32
  }
  func.func @transform_11(%arg0: i32) -> (i32, i32) {
    %c0_i32 = arith.constant 0 : i32
    %c0_i32_0 = arith.constant 0 : i32
    %c0_i32_1 = arith.constant 0 : i32
    return %c0_i32, %c0_i32_0 : i32, i32
  }
  func.func @transform_12(%arg0: i32) -> (i32, i32) {
    %c0_i32 = arith.constant 0 : i32
    %c0_i32_0 = arith.constant 0 : i32
    %c0_i32_1 = arith.constant 0 : i32
    return %c0_i32, %c0_i32_0 : i32, i32
  }
  func.func @transform_13(%arg0: i32) -> (i32, i32) {
    %c0_i32 = arith.constant 0 : i32
    %c0_i32_0 = arith.constant 0 : i32
    %c0_i32_1 = arith.constant 0 : i32
    return %c0_i32, %c0_i32_0 : i32, i32
  }
  func.func @transform_14(%arg0: i32) -> (i32, i32) {
    %c0_i32 = arith.constant 0 : i32
    %c0_i32_0 = arith.constant 0 : i32
    %c0_i32_1 = arith.constant 0 : i32
    return %c0_i32, %c0_i32_0 : i32, i32
  }
  func.func @transform_15(%arg0: i32) -> (i32, i32) {
    %c0_i32 = arith.constant 0 : i32
    %c0_i32_0 = arith.constant 0 : i32
    return %arg0, %c0_i32 : i32, i32
  }
}

</mosaic_0001>

<bundles_post_ra>
// kernel: forward.1
= control target key start
LH: loop header
LB: loop body
LE: loop exit
PB: predicated region body
PF: predicated region fallthrough
CT: control target
= control target key end

     0   :  { %20 = vsyncpa [#allocation3], 0  ;;  %s1519_s0 = inlined_call_operand.vmem [shape: f32[16,64], index: 0, kind: input, shape index: {}]   ;;  %s1520_s1 = inlined_call_operand.hbm [shape: f32[64,128], index: 1, kind: input, shape index: {}]   ;;  %s1521_s2 = inlined_call_operand.vmem [shape: f32[1,128], index: 2, kind: input, shape index: {}]   ;;  %s1522_s3 = inlined_call_operand.hbm [shape: f32[128,128], index: 3, kind: input, shape index: {}]   ;;  %s1523_s4 = inlined_call_operand.vmem [shape: f32[1,128], index: 4, kind: input, shape index: {}]   ;;  %s1524_s5 = inlined_call_operand.hbm [shape: f32[64,128], index: 5, kind: input, shape index: {}]   ;;  %s1525_s6 = inlined_call_operand.vmem [shape: f32[1,128], index: 6, kind: input, shape index: {}]   ;;  %s1526_s7 = inlined_call_operand.hbm [shape: f32[128,128], index: 7, kind: input, shape index: {}]   ;;  %s1527_s8 = inlined_call_operand.vmem [shape: f32[1,128], index: 8, kind: input, shape index: {}]   ;;  %s1528_s9 = inlined_call_operand.hbm [shape: f32[64,128], index: 9, kind: input, shape index: {}]   ;;  %s1529_s10 = inlined_call_operand.vmem [shape: f32[1,128], index: 10, kind: input, shape index: {}]   ;;  %s1530_s11 = inlined_call_operand.hbm [shape: f32[128,128], index: 11, kind: input, shape index: {}]   ;;  %s1531_s12 = inlined_call_operand.vmem [shape: f32[1,128], index: 12, kind: input, shape index: {}]   ;;  %s1532_s13 = inlined_call_operand.hbm [shape: f32[128,128], index: 13, kind: input, shape index: {}]   ;;  %s1533_s14 = inlined_call_operand.vmem [shape: f32[1,128], index: 14, kind: input, shape index: {}]   ;;  %s1534_s15 = inlined_call_operand.vmem [shape: f32[16,128], index: 15, kind: output, shape index: {}]  }
   0x1   :  { %21 = vsyncpa [#allocation5], 0 }
   0x2   :  { %22 = vsyncpa [#allocation8], 0 }
   0x3   :  { %23 = vsyncpa [#allocation11], 0  ;;  %s1344_s18 = smov [#allocation4]   ;;  %s1345_s20 = smov [#allocation7]  }
   0x4   :  { %s45_s19 = sshll.u32 %s1344_s18, 4  ;;  %s73_s21 = sshll.u32 %s1345_s20, 4  ;;  %s46_s19 = int_to_ptr.vmem [resolvable:$true] %s45_s19  ;;  %s74_s21 = int_to_ptr.vmem [resolvable:$true] %s73_s21 }
   0x5   :  { %s1204_s22 = scalar_lea.vmem %s46_s19, 2048  ;;  %p1209_p1 = scmp.lt.s32.totalorder %s46_s19, %s46_s19 }
   0x6   :  { %p1205_p0 = scmp.ne.s32.totalorder %s46_s19, %s1204_s22  ;;  %p1210_p2 = scmp.lt.s32.totalorder %s1204_s22, %s1204_s22 }
   0x8   :  { %p1211_p3 = por %p1210_p2, %p1209_p1 }
   0xa   :  { %p1212_p4 = pnand %p1211_p3, %p1205_p0 }
   0xc   :  { %1215 = shalt.err (!%p1212_p4)
}
   0xd   :  { %s1346_s23 = smov 128   ;;  %s1347_s24 = smov 8  }
   0xe   :  { %51 = dma.hbm_to_vmem [thread:$0]  %s1522_s3, 2048, %s46_s19, [#allocation5], %s1346_s23, %s1346_s23, %s1347_s24  }
   0xf   :  { %s1224_s27 = scalar_lea.vmem %s74_s21, 2048  ;;  %p1229_p6 = scmp.lt.s32.totalorder %s74_s21, %s74_s21 }
  0x10   :  { %p1225_p5 = scmp.ne.s32.totalorder %s74_s21, %s1224_s27  ;;  %p1230_p7 = scmp.lt.s32.totalorder %s1224_s27, %s1224_s27 }
  0x12   :  { %p1231_p8 = por %p1230_p7, %p1229_p6 }
  0x14   :  { %p1232_p9 = pnand %p1231_p8, %p1225_p5 }
  0x16   :  { %1235 = shalt.err (!%p1232_p9)
}
  0x17   :  { %79 = dma.hbm_to_vmem [thread:$0]  %s1526_s7, 2048, %s74_s21, [#allocation8], %s1346_s23, %s1346_s23, %s1347_s24  }
  0x18   :  { %s1348_s30 = smov [#allocation10]   ;;  %s1349_s17 = smov [#allocation2]  }
  0x19   :  { %s101_s16 = sshll.u32 %s1348_s30, 4  ;;  %s31_s18 = sshll.u32 %s1349_s17, 4  ;;  %s102_s16 = int_to_ptr.vmem [resolvable:$true] %s101_s16  ;;  %s32_s18 = int_to_ptr.vmem [resolvable:$true] %s31_s18 }
  0x1a   :  { %s1244_s3 = scalar_lea.vmem %s102_s16, 2048  ;;  %p1249_p11 = scmp.lt.s32.totalorder %s102_s16, %s102_s16 }
  0x1b   :  { %p1245_p10 = scmp.ne.s32.totalorder %s102_s16, %s1244_s3  ;;  %p1250_p12 = scmp.lt.s32.totalorder %s1244_s3, %s1244_s3 }
  0x1d   :  { %p1251_p13 = por %p1250_p12, %p1249_p11 }
  0x1f   :  { %p1252_p0 = pnand %p1251_p13, %p1245_p10 }
  0x21   :  { %1255 = shalt.err (!%p1252_p0)
}
  0x22   :  { %107 = dma.hbm_to_vmem [thread:$0]  %s1530_s11, 2048, %s102_s16, [#allocation11], %s1346_s23, %s1346_s23, %s1347_s24  }
  0x23   :  { %s1264_s7 = scalar_lea.vmem %s32_s18, 1024  ;;  %p1269_p2 = scmp.lt.s32.totalorder %s32_s18, %s32_s18 }
  0x24   :  { %p1265_p1 = scmp.ne.s32.totalorder %s32_s18, %s1264_s7  ;;  %p1270_p3 = scmp.lt.s32.totalorder %s1264_s7, %s1264_s7 }
  0x26   :  { %p1271_p4 = por %p1270_p3, %p1269_p2 }
  0x28   :  { %p1272_p5 = pnand %p1271_p4, %p1265_p1 }
  0x2a   :  { %1275 = shalt.err (!%p1272_p5)
}
  0x2b   :  { %37 = dma.hbm_to_vmem [thread:$0]  %s1520_s1, 1024, %s32_s18, [#allocation3], %s1346_s23, %s1346_s23, %s1347_s24  }
  0x2c   :  { %s1350_s25 = smov [#allocation6]   ;;  %s1351_s27 = smov [#allocation9]  }
  0x2d   :  { %s59_s26 = sshll.u32 %s1350_s25, 4  ;;  %s87_s28 = sshll.u32 %s1351_s27, 4  ;;  %s60_s26 = int_to_ptr.vmem [resolvable:$true] %s59_s26  ;;  %s88_s28 = int_to_ptr.vmem [resolvable:$true] %s87_s28 }
  0x2e   :  { %s1284_s11 = scalar_lea.vmem %s60_s26, 1024  ;;  %p1289_p7 = scmp.lt.s32.totalorder %s60_s26, %s60_s26 }
  0x2f   :  { %p1285_p6 = scmp.ne.s32.totalorder %s60_s26, %s1284_s11  ;;  %p1290_p8 = scmp.lt.s32.totalorder %s1284_s11, %s1284_s11 }
  0x31   :  { %p1291_p9 = por %p1290_p8, %p1289_p7 }
  0x33   :  { %p1292_p10 = pnand %p1291_p9, %p1285_p6 }
  0x35   :  { %1295 = shalt.err (!%p1292_p10)
}
  0x36   :  { %65 = dma.hbm_to_vmem [thread:$0]  %s1524_s5, 1024, %s60_s26, [#allocation5], %s1346_s23, %s1346_s23, %s1347_s24  }
  0x37   :  { %s1304_s1 = scalar_lea.vmem %s88_s28, 1024  ;;  %p1309_p12 = scmp.lt.s32.totalorder %s88_s28, %s88_s28 }
  0x38   :  { %p1305_p11 = scmp.ne.s32.totalorder %s88_s28, %s1304_s1  ;;  %p1310_p13 = scmp.lt.s32.totalorder %s1304_s1, %s1304_s1 }
  0x3a   :  { %p1311_p0 = por %p1310_p13, %p1309_p12 }
  0x3c   :  { %p1312_p1 = pnand %p1311_p0, %p1305_p11 }
  0x3e   :  { %1315 = shalt.err (!%p1312_p1)
}
  0x3f   :  { %93 = dma.hbm_to_vmem [thread:$0]  %s1528_s9, 1024, %s88_s28, [#allocation8], %s1346_s23, %s1346_s23, %s1347_s24  }
  0x40   :  { %s1352_s18 = smov [#allocation12]  }
  0x41   :  { %s115_s3 = sshll.u32 %s1352_s18, 4  ;;  %s116_s3 = int_to_ptr.vmem [resolvable:$true] %s115_s3 }
  0x42   :  { %s1324_s19 = scalar_lea.vmem %s116_s3, 2048  ;;  %p1329_p3 = scmp.lt.s32.totalorder %s116_s3, %s116_s3 }
  0x43   :  { %p1325_p2 = scmp.ne.s32.totalorder %s116_s3, %s1324_s19  ;;  %p1330_p4 = scmp.lt.s32.totalorder %s1324_s19, %s1324_s19 }
  0x45   :  { %p1331_p5 = por %p1330_p4, %p1329_p3 }
  0x47   :  { %p1332_p6 = pnand %p1331_p5, %p1325_p2 }
  0x49   :  { %1335 = shalt.err (!%p1332_p6)
}
  0x4a   :  { %121 = dma.hbm_to_vmem [thread:$0]  %s1532_s13, 2048, %s116_s3, [#allocation11], %s1346_s23, %s1346_s23, %s1347_s24  }
  0x4b   :  { %1336 = dma.done.wait [#allocation3], 1024  }
  0x4c   :  { %1337 = vsyncadd [#allocation3], 4294966272 }
  0x4d   :  { %1338 = dma.done.wait [#allocation5], 3072  }
  0x4e   :  { %1339 = vsyncadd [#allocation5], 4294964224 }
  0x4f   :  { %1340 = dma.done.wait [#allocation8], 3072  }
  0x50   :  { %1341 = vsyncadd [#allocation8], 4294964224 }
  0x51   :  { %1342 = dma.done.wait [#allocation11], 4096  }
  0x52   :  { %1343 = vsyncadd [#allocation11], 4294963200  ;;  %v154_v0 = vld [vmem:[#allocation2 + $0x38] sm:$0xff]  ;;  %v153_v1 = vld [vmem:[#allocation2 + $0x30] sm:$0xff]  ;;  %vm162_vm0 = vcmask 523264   ;;  %s1353_s22 = smov 64  }
  0x53   :  { %989 = vmatprep.subr.mxu0 %v154_v0  ;;  %v152_v2 = vld [vmem:[#allocation2 + $0x28] sm:$0xff]  ;;  %v145_v3 = vld [vmem:[%s1519_s0] sm:$0xff]  ;;  %v261_v4 = vld [vmem:[#allocation4 + $0x78] sm:$0xff] }
  0x54   :  { %990 = vmatpush3.msra.mxu0 %v154_v0  ;;  %1005 = vmatprep.mubr.msk.f32.mxu0 %vm162_vm0, %v145_v3  ;;  %v260_v5 = vld [vmem:[#allocation4 + $0x70] sm:$0xff]  ;;  %v151_v6 = vld [vmem:[#allocation2 + $0x20] sm:$0xff]  ;;  %v259_v7 = vld [vmem:[#allocation4 + $0x68] sm:$0xff] }
  0x55   :  { %991 = vmatprep.subr.mxu0 %v153_v1  ;;  %1008 = vmatprep.subr.mxu1 %v261_v4  ;;  %v150_v8 = vld [vmem:[#allocation2 + $0x18] sm:$0xff]  ;;  %v258_v9 = vld [vmem:[#allocation4 + $0x60] sm:$0xff]  ;;  %v149_v10 = vld [vmem:[#allocation2 + $0x10] sm:$0xff] }
  0x56   :  { %992 = vmatpush3.msra.mxu0 %v153_v1  ;;  %1009 = vmatpush3.msra.mxu1 %v261_v4  ;;  %v257_v11 = vld [vmem:[#allocation4 + $0x58] sm:$0xff]  ;;  %v148_v12 = vld [vmem:[#allocation2 + $0x8] sm:$0xff]  ;;  %v256_v13 = vld [vmem:[#allocation4 + $0x50] sm:$0xff] }
  0x57   :  { %993 = vmatprep.subr.mxu0 %v152_v2  ;;  %1010 = vmatprep.subr.mxu1 %v260_v5  ;;  %v147_v14 = vld [vmem:[#allocation2] sm:$0xff]  ;;  %v255_v15 = vld [vmem:[#allocation4 + $0x48] sm:$0xff]  ;;  %v253_v18 = vld [vmem:[#allocation4 + $0x38] sm:$0xff] }
  0x58   :  { %994 = vmatpush3.msra.mxu0 %v152_v2  ;;  %1011 = vmatpush3.msra.mxu1 %v260_v5  ;;  %v146_v16 = vld [vmem:[%s1519_s0 + $0x8] sm:$0xff]  ;;  %v254_v17 = vld [vmem:[#allocation4 + $0x40] sm:$0xff]  ;;  %v252_v19 = vld [vmem:[#allocation4 + $0x30] sm:$0xff] }
  0x59   :  { %995 = vmatprep.subr.mxu0 %v151_v6  ;;  %1012 = vmatprep.subr.mxu1 %v259_v7  ;;  %v251_v20 = vld [vmem:[#allocation4 + $0x28] sm:$0xff]  ;;  %v250_v21 = vld [vmem:[#allocation4 + $0x20] sm:$0xff]  ;;  %v249_v22 = vld [vmem:[#allocation4 + $0x18] sm:$0xff] }
  0x5a   :  { %996 = vmatpush3.msra.mxu0 %v151_v6  ;;  %1013 = vmatpush3.msra.mxu1 %v259_v7  ;;  %v248_v23 = vld [vmem:[#allocation4 + $0x10] sm:$0xff]  ;;  %v247_v24 = vld [vmem:[#allocation4 + $0x8] sm:$0xff]  ;;  %v246_v25 = vld [vmem:[#allocation4] sm:$0xff] }
  0x5b   :  { %997 = vmatprep.subr.mxu0 %v150_v8  ;;  %1014 = vmatprep.subr.mxu1 %v258_v9  ;;  %v874_v26 = vld [vmem:[%s1521_s2] ss:$0 sm:$0xff]  ;;  %v363_v33 = vld [vmem:[#allocation6 + $0x38] sm:$0xff]  ;;  %v362_v34 = vld [vmem:[#allocation6 + $0x30] sm:$0xff] }
  0x5c   :  { %998 = vmatpush3.msra.mxu0 %v150_v8  ;;  %1015 = vmatpush3.msra.mxu1 %v258_v9  ;;  %v361_v35 = vld [vmem:[#allocation6 + $0x28] sm:$0xff]  ;;  %v360_v36 = vld [vmem:[#allocation6 + $0x20] sm:$0xff]  ;;  %v359_v37 = vld [vmem:[#allocation6 + $0x18] sm:$0xff] }
  0x5d   :  { %999 = vmatprep.subr.mxu0 %v149_v10  ;;  %1016 = vmatprep.subr.mxu1 %v257_v11  ;;  %v358_v38 = vld [vmem:[#allocation6 + $0x10] sm:$0xff]  ;;  %v357_v39 = vld [vmem:[#allocation6 + $0x8] sm:$0xff]  ;;  %v356_v40 = vld [vmem:[#allocation6] sm:$0xff] }
  0x5e   :  { %1000 = vmatpush3.msra.mxu0 %v149_v10  ;;  %1017 = vmatpush3.msra.mxu1 %v257_v11  ;;  %v469_v42 = vld [vmem:[#allocation7 + $0x78] sm:$0xff]  ;;  %v877_v43 = vld [vmem:[%s1523_s4] ss:$0 sm:$0xff]  ;;  %v468_v53 = vld [vmem:[#allocation7 + $0x70] sm:$0xff] }
  0x5f   :  { %1001 = vmatprep.subr.mxu0 %v148_v12  ;;  %1018 = vmatprep.subr.mxu1 %v256_v13  ;;  %v467_v54 = vld [vmem:[#allocation7 + $0x68] sm:$0xff]  ;;  %v466_v55 = vld [vmem:[#allocation7 + $0x60] sm:$0xff]  ;;  %v465_v56 = vld [vmem:[#allocation7 + $0x58] sm:$0xff] }
  0x60   :  { %1002 = vmatpush3.msra.mxu0 %v148_v12  ;;  %1019 = vmatpush3.msra.mxu1 %v256_v13  ;;  %v464_v57 = vld [vmem:[#allocation7 + $0x50] sm:$0xff]  ;;  %v463_v58 = vld [vmem:[#allocation7 + $0x48] sm:$0xff]  ;;  %v462_v59 = vld [vmem:[#allocation7 + $0x40] sm:$0xff] }
  0x61   :  { %1003 = vmatprep.subr.mxu0 %v147_v14  ;;  %1020 = vmatprep.subr.mxu1 %v255_v15  ;;  %v461_v60 = vld [vmem:[#allocation7 + $0x38] sm:$0xff]  ;;  %v460_v61 = vld [vmem:[#allocation7 + $0x30] sm:$0xff]  ;;  %v459_v62 = vld [vmem:[#allocation7 + $0x28] sm:$0xff] }
  0x62   :  { %1004 = vmatpush3.msra.mxu0 %v147_v14  ;;  %1021 = vmatpush3.msra.mxu1 %v255_v15  ;;  %v458_v63 = vld [vmem:[#allocation7 + $0x20] sm:$0xff]  ;;  %v457_v0 = vld [vmem:[#allocation7 + $0x18] sm:$0xff]  ;;  %v456_v1 = vld [vmem:[#allocation7 + $0x10] sm:$0xff] }
  0x63   :  { %1006 = vmatmul.mubr.msk.f32.vlgmr.msra.gmra.mxu0 %vm162_vm0, %v146_v16  ;;  %1022 = vmatprep.subr.mxu1 %v254_v17  ;;  %v455_v2 = vld [vmem:[#allocation7 + $0x8] sm:$0xff]  ;;  %v454_v3 = vld [vmem:[#allocation7] sm:$0xff]  ;;  %v571_v11 = vld [vmem:[#allocation9 + $0x38] sm:$0xff] }
  0x64   :  { %1023 = vmatpush3.msra.mxu1 %v254_v17  ;;  %1043 = vmatprep.subr.mxu0 %v363_v33  ;;  %v878_v4 = vld [vmem:[%s1525_s6] ss:$0 sm:$0xff]  ;;  %v570_v12 = vld [vmem:[#allocation9 + $0x30] sm:$0xff]  ;;  %v569_v13 = vld [vmem:[#allocation9 + $0x28] sm:$0xff] }
  0x65   :  { %1024 = vmatprep.subr.mxu1 %v253_v18  ;;  %1044 = vmatpush3.msra.mxu0 %v363_v33  ;;  %v568_v14 = vld [vmem:[#allocation9 + $0x20] sm:$0xff]  ;;  %v567_v15 = vld [vmem:[#allocation9 + $0x18] sm:$0xff]  ;;  %v566_v16 = vld [vmem:[#allocation9 + $0x10] sm:$0xff] }
  0x66   :  { %1025 = vmatpush3.msra.mxu1 %v253_v18  ;;  %1045 = vmatprep.subr.mxu0 %v362_v34  ;;  %v565_v17 = vld [vmem:[#allocation9 + $0x8] sm:$0xff]  ;;  %v564_v18 = vld [vmem:[#allocation9] sm:$0xff] }
  0x67   :  { %1026 = vmatprep.subr.mxu1 %v252_v19  ;;  %1046 = vmatpush3.msra.mxu0 %v362_v34  ;;  %v676_v33 = vld [vmem:[#allocation10 + $0x60] sm:$0xff]  ;;  %v675_v34 = vld [vmem:[#allocation10 + $0x58] sm:$0xff] }
  0x68   :  { %1027 = vmatpush3.msra.mxu1 %v252_v19  ;;  %1047 = vmatprep.subr.mxu0 %v361_v35 }
  0x69   :  { %1028 = vmatprep.subr.mxu1 %v251_v20  ;;  %1048 = vmatpush3.msra.mxu0 %v361_v35  ;;  %v674_v35 = vld [vmem:[#allocation10 + $0x50] sm:$0xff] }
  0x6a   :  { %1029 = vmatpush3.msra.mxu1 %v251_v20  ;;  %1049 = vmatprep.subr.mxu0 %v360_v36  ;;  %v679_v20 = vld [vmem:[#allocation10 + $0x78] sm:$0xff] }
  0x6b   :  { %1030 = vmatprep.subr.mxu1 %v250_v21  ;;  %1050 = vmatpush3.msra.mxu0 %v360_v36  ;;  %v673_v36 = vld [vmem:[#allocation10 + $0x48] sm:$0xff] }
  0x6c   :  { %1031 = vmatpush3.msra.mxu1 %v250_v21  ;;  %1051 = vmatprep.subr.mxu0 %v359_v37  ;;  %v881_v21 = vld [vmem:[%s1527_s8] ss:$0 sm:$0xff] }
  0x6d   :  { %1032 = vmatprep.subr.mxu1 %v249_v22  ;;  %1052 = vmatpush3.msra.mxu0 %v359_v37  ;;  %v672_v37 = vld [vmem:[#allocation10 + $0x40] sm:$0xff] }
  0x6e   :  { %1033 = vmatpush3.msra.mxu1 %v249_v22  ;;  %1053 = vmatprep.subr.mxu0 %v358_v38 }
  0x6f   :  { %1034 = vmatprep.subr.mxu1 %v248_v23  ;;  %1054 = vmatpush3.msra.mxu0 %v358_v38  ;;  %v671_v38 = vld [vmem:[#allocation10 + $0x38] sm:$0xff] }
  0x70   :  { %1035 = vmatpush3.msra.mxu1 %v248_v23  ;;  %1055 = vmatprep.subr.mxu0 %v357_v39 }
  0x71   :  { %1036 = vmatprep.subr.mxu1 %v247_v24  ;;  %1056 = vmatpush3.msra.mxu0 %v357_v39  ;;  %v670_v39 = vld [vmem:[#allocation10 + $0x30] sm:$0xff] }
  0x72   :  { %1037 = vmatpush3.msra.mxu1 %v247_v24  ;;  %1057 = vmatprep.subr.mxu0 %v356_v40 }
  0x73   :  { %1038 = vmatprep.subr.mxu1 %v246_v25  ;;  %1058 = vmatpush3.msra.mxu0 %v356_v40  ;;  %v669_v40 = vld [vmem:[#allocation10 + $0x28] sm:$0xff] }
  0x74   :  { %1039 = vmatpush3.msra.mxu1 %v246_v25  ;;  %1062 = vmatprep.subr.mxu0 %v469_v42 }
  0x75   :  { %1097 = vmatprep.subr.mxu1 %v571_v11 }
 0x123   :  { %v1007_v27 = vpop.f32.mrf.mxu0 }
 0x124   :  { %v241_v28 = vadd.f32 %v1007_v27, %v874_v26 }
 0x125   :  { %v235_v29 = vpop.f32.mrf.mxu0 }
 0x126   :  { %v236_v30 = vadd.f32 %v874_v26, %v235_v29  ;;  %v245_v32 = vmax.f32 %v241_v28, 0.0 }
 0x128   :  { %v244_v31 = vmax.f32 %v236_v30, 0.0 }
 0x12a   :  { %1040 = vmatprep.mubr.f32.mxu1 %v244_v31  ;;  %v678_v31 = vld [vmem:[#allocation10 + $0x70] sm:$0xff] }
 0x12b   :  { %1041 = vmatmul.mubr.f32.vlgmr.msra.gmra.mxu1 %v245_v32  ;;  %v677_v32 = vld [vmem:[#allocation10 + $0x68] sm:$0xff] }
 0x12c   :  { %1098 = vmatpush3.msra.mxu1 %v571_v11 }
 0x12d   :  { %1099 = vmatprep.subr.mxu1 %v570_v12 }
 0x12e   :  { %1100 = vmatpush3.msra.mxu1 %v570_v12 }
 0x12f   :  { %1101 = vmatprep.subr.mxu1 %v569_v13 }
 0x130   :  { %1102 = vmatpush3.msra.mxu1 %v569_v13 }
 0x131   :  { %1103 = vmatprep.subr.mxu1 %v568_v14 }
 0x132   :  { %1104 = vmatpush3.msra.mxu1 %v568_v14 }
 0x133   :  { %1105 = vmatprep.subr.mxu1 %v567_v15 }
 0x134   :  { %1106 = vmatpush3.msra.mxu1 %v567_v15 }
 0x135   :  { %1107 = vmatprep.subr.mxu1 %v566_v16 }
 0x136   :  { %1108 = vmatpush3.msra.mxu1 %v566_v16  ;;  %v886_v16 = vld [vmem:[%s1533_s14] ss:$0 sm:$0xff] }
 0x137   :  { %1109 = vmatprep.subr.mxu1 %v565_v17 }
 0x138   :  { %1110 = vmatpush3.msra.mxu1 %v565_v17 }
 0x139   :  { %1111 = vmatprep.subr.mxu1 %v564_v18 }
 0x13a   :  { %1112 = vmatpush3.msra.mxu1 %v564_v18 }
 0x13b   :  { %1116 = vmatprep.subr.mxu1 %v679_v20 }
 0x1eb   :  { %v1042_v41 = vpop.f32.mrf.mxu1 }
 0x1ec   :  { %v341_v46 = vadd.f32 %v1042_v41, %v877_v43  ;;  %v668_v41 = vld [vmem:[#allocation10 + $0x20] sm:$0xff] }
 0x1ed   :  { %v335_v44 = vpop.f32.mrf.mxu1 }
 0x1ee   :  { %v336_v45 = vadd.f32 %v877_v43, %v335_v44  ;;  %v345_v48 = vmax.f32 %v341_v46, 0.0  ;;  %v666_v43 = vld [vmem:[#allocation10 + $0x10] sm:$0xff]  ;;  %v665_v44 = vld [vmem:[#allocation10 + $0x8] sm:$0xff]  ;;  %v781_v46 = vld [vmem:[#allocation12 + $0x78] sm:$0xff] }
 0x1f0   :  { %v344_v47 = vmax.f32 %v336_v45, 0.0  ;;  %v664_v45 = vld [vmem:[#allocation10] sm:$0xff] }
 0x1f2   :  { %348 = vrot.lane.b32.xlu0 %v344_v47, %s1353_s22 }
 0x1f6   :  { %350 = vrot.lane.b32.xlu0 %v345_v48, %s1353_s22 }
 0x264   :  { %v349_v49 = vpop.permute.xlu0 %348 }
 0x265   :  { %v354_v50 = vmax.f32 %v344_v47, %v349_v49  ;;  %v780_v47 = vld [vmem:[#allocation12 + $0x70] sm:$0xff]  ;;  %v778_v49 = vld [vmem:[#allocation12 + $0x60] sm:$0xff] }
 0x267   :  { %1059 = vmatprep.mubr.msk.f32.mxu0 %vm162_vm0, %v354_v50  ;;  %v777_v50 = vld [vmem:[#allocation12 + $0x58] sm:$0xff] }
 0x268   :  { %v351_v51 = vpop.permute.xlu0 %350 }
 0x269   :  { %v355_v52 = vmax.f32 %v345_v48, %v351_v51  ;;  %v779_v48 = vld [vmem:[#allocation12 + $0x68] sm:$0xff]  ;;  %v776_v51 = vld [vmem:[#allocation12 + $0x50] sm:$0xff] }
 0x26b   :  { %1060 = vmatmul.mubr.msk.f32.vlgmr.msra.gmra.mxu0 %vm162_vm0, %v355_v52  ;;  %v775_v52 = vld [vmem:[#allocation12 + $0x48] sm:$0xff] }
 0x26c   :  { %1063 = vmatpush3.msra.mxu0 %v469_v42  ;;  %v667_v42 = vld [vmem:[#allocation10 + $0x18] sm:$0xff] }
 0x26d   :  { %1064 = vmatprep.subr.mxu0 %v468_v53 }
 0x26e   :  { %1065 = vmatpush3.msra.mxu0 %v468_v53  ;;  %v774_v53 = vld [vmem:[#allocation12 + $0x40] sm:$0xff] }
 0x26f   :  { %1066 = vmatprep.subr.mxu0 %v467_v54 }
 0x270   :  { %1067 = vmatpush3.msra.mxu0 %v467_v54  ;;  %v773_v54 = vld [vmem:[#allocation12 + $0x38] sm:$0xff] }
 0x271   :  { %1068 = vmatprep.subr.mxu0 %v466_v55 }
 0x272   :  { %1069 = vmatpush3.msra.mxu0 %v466_v55  ;;  %v772_v55 = vld [vmem:[#allocation12 + $0x30] sm:$0xff] }
 0x273   :  { %1070 = vmatprep.subr.mxu0 %v465_v56 }
 0x274   :  { %1071 = vmatpush3.msra.mxu0 %v465_v56  ;;  %v771_v56 = vld [vmem:[#allocation12 + $0x28] sm:$0xff] }
 0x275   :  { %1072 = vmatprep.subr.mxu0 %v464_v57 }
 0x276   :  { %1073 = vmatpush3.msra.mxu0 %v464_v57  ;;  %v882_v57 = vld [vmem:[%s1529_s10] ss:$0 sm:$0xff] }
 0x277   :  { %1074 = vmatprep.subr.mxu0 %v463_v58 }
 0x278   :  { %1075 = vmatpush3.msra.mxu0 %v463_v58 }
 0x279   :  { %1076 = vmatprep.subr.mxu0 %v462_v59 }
 0x27a   :  { %1077 = vmatpush3.msra.mxu0 %v462_v59 }
 0x27b   :  { %1078 = vmatprep.subr.mxu0 %v461_v60 }
 0x27c   :  { %1079 = vmatpush3.msra.mxu0 %v461_v60 }
 0x27d   :  { %1080 = vmatprep.subr.mxu0 %v460_v61 }
 0x27e   :  { %1081 = vmatpush3.msra.mxu0 %v460_v61 }
 0x27f   :  { %1082 = vmatprep.subr.mxu0 %v459_v62 }
 0x280   :  { %1083 = vmatpush3.msra.mxu0 %v459_v62 }
 0x281   :  { %1084 = vmatprep.subr.mxu0 %v458_v63 }
 0x282   :  { %1085 = vmatpush3.msra.mxu0 %v458_v63 }
 0x283   :  { %1086 = vmatprep.subr.mxu0 %v457_v0 }
 0x284   :  { %1087 = vmatpush3.msra.mxu0 %v457_v0 }
 0x285   :  { %1088 = vmatprep.subr.mxu0 %v456_v1 }
 0x286   :  { %1089 = vmatpush3.msra.mxu0 %v456_v1 }
 0x287   :  { %1090 = vmatprep.subr.mxu0 %v455_v2 }
 0x288   :  { %1091 = vmatpush3.msra.mxu0 %v455_v2  ;;  %v770_v2 = vld [vmem:[#allocation12 + $0x20] sm:$0xff] }
 0x289   :  { %1092 = vmatprep.subr.mxu0 %v454_v3 }
 0x28a   :  { %1093 = vmatpush3.msra.mxu0 %v454_v3  ;;  %v769_v3 = vld [vmem:[#allocation12 + $0x18] sm:$0xff] }
 0x28b   :  { %1151 = vmatprep.subr.mxu0 %v781_v46 }
 0x32b   :  { %v1061_v5 = vpop.f32.mrf.mxu0 }
 0x32c   :  { %v449_v6 = vadd.f32 %v1061_v5, %v878_v4  ;;  %v767_v5 = vld [vmem:[#allocation12 + $0x8] sm:$0xff] }
 0x32d   :  { %v443_v7 = vpop.f32.mrf.mxu0 }
 0x32e   :  { %v444_v8 = vadd.f32 %v878_v4, %v443_v7  ;;  %v453_v10 = vmax.f32 %v449_v6, 0.0  ;;  %v768_v4 = vld [vmem:[#allocation12 + $0x10] sm:$0xff]  ;;  %v766_v6 = vld [vmem:[#allocation12] sm:$0xff] }
 0x32f   :  { %v885_v7 = vld [vmem:[%s1531_s12] ss:$0 sm:$0xff] }
 0x330   :  { %v452_v9 = vmax.f32 %v444_v8, 0.0 }
 0x332   :  { %1094 = vmatprep.mubr.f32.mxu0 %v452_v9 }
 0x333   :  { %1095 = vmatmul.mubr.f32.vlgmr.msra.gmra.mxu0 %v453_v10 }
 0x334   :  { %1152 = vmatpush3.msra.mxu0 %v781_v46 }
 0x335   :  { %1153 = vmatprep.subr.mxu0 %v780_v47 }
 0x336   :  { %1154 = vmatpush3.msra.mxu0 %v780_v47 }
 0x337   :  { %1155 = vmatprep.subr.mxu0 %v779_v48 }
 0x338   :  { %1156 = vmatpush3.msra.mxu0 %v779_v48 }
 0x339   :  { %1157 = vmatprep.subr.mxu0 %v778_v49 }
 0x33a   :  { %1158 = vmatpush3.msra.mxu0 %v778_v49 }
 0x33b   :  { %1159 = vmatprep.subr.mxu0 %v777_v50 }
 0x33c   :  { %1160 = vmatpush3.msra.mxu0 %v777_v50 }
 0x33d   :  { %1161 = vmatprep.subr.mxu0 %v776_v51 }
 0x33e   :  { %1162 = vmatpush3.msra.mxu0 %v776_v51 }
 0x33f   :  { %1163 = vmatprep.subr.mxu0 %v775_v52 }
 0x340   :  { %1164 = vmatpush3.msra.mxu0 %v775_v52 }
 0x341   :  { %1165 = vmatprep.subr.mxu0 %v774_v53 }
 0x342   :  { %1166 = vmatpush3.msra.mxu0 %v774_v53 }
 0x343   :  { %1167 = vmatprep.subr.mxu0 %v773_v54 }
 0x344   :  { %1168 = vmatpush3.msra.mxu0 %v773_v54 }
 0x345   :  { %1169 = vmatprep.subr.mxu0 %v772_v55 }
 0x346   :  { %1170 = vmatpush3.msra.mxu0 %v772_v55 }
 0x347   :  { %1171 = vmatprep.subr.mxu0 %v771_v56 }
 0x348   :  { %1172 = vmatpush3.msra.mxu0 %v771_v56 }
 0x349   :  { %1173 = vmatprep.subr.mxu0 %v770_v2 }
 0x34a   :  { %1174 = vmatpush3.msra.mxu0 %v770_v2 }
 0x34b   :  { %1175 = vmatprep.subr.mxu0 %v769_v3 }
 0x34c   :  { %1176 = vmatpush3.msra.mxu0 %v769_v3 }
 0x34d   :  { %1177 = vmatprep.subr.mxu0 %v768_v4 }
 0x34e   :  { %1178 = vmatpush3.msra.mxu0 %v768_v4 }
 0x34f   :  { %1179 = vmatprep.subr.mxu0 %v767_v5 }
 0x350   :  { %1180 = vmatpush3.msra.mxu0 %v767_v5 }
 0x351   :  { %1181 = vmatprep.subr.mxu0 %v766_v6 }
 0x352   :  { %1182 = vmatpush3.msra.mxu0 %v766_v6 }
 0x3f3   :  { %v1096_v19 = vpop.f32.mrf.mxu0 }
 0x3f4   :  { %v549_v24 = vadd.f32 %v1096_v19, %v881_v21 }
 0x3f5   :  { %v543_v22 = vpop.f32.mrf.mxu0 }
 0x3f6   :  { %v544_v23 = vadd.f32 %v881_v21, %v543_v22  ;;  %v553_v26 = vmax.f32 %v549_v24, 0.0 }
 0x3f8   :  { %v552_v25 = vmax.f32 %v544_v23, 0.0 }
 0x3fa   :  { %556 = vrot.lane.b32.xlu1 %v552_v25, %s1353_s22 }
 0x3fe   :  { %558 = vrot.lane.b32.xlu1 %v553_v26, %s1353_s22 }
 0x46c   :  { %v557_v27 = vpop.permute.xlu1 %556 }
 0x46d   :  { %v562_v28 = vmax.f32 %v552_v25, %v557_v27 }
 0x46f   :  { %1113 = vmatprep.mubr.msk.f32.mxu1 %vm162_vm0, %v562_v28 }
 0x470   :  { %v559_v29 = vpop.permute.xlu1 %558 }
 0x471   :  { %v563_v30 = vmax.f32 %v553_v26, %v559_v29 }
 0x473   :  { %1114 = vmatmul.mubr.msk.f32.vlgmr.msra.gmra.mxu1 %vm162_vm0, %v563_v30 }
 0x474   :  { %1117 = vmatpush3.msra.mxu1 %v679_v20 }
 0x475   :  { %1118 = vmatprep.subr.mxu1 %v678_v31 }
 0x476   :  { %1119 = vmatpush3.msra.mxu1 %v678_v31 }
 0x477   :  { %1120 = vmatprep.subr.mxu1 %v677_v32 }
 0x478   :  { %1121 = vmatpush3.msra.mxu1 %v677_v32 }
 0x479   :  { %1122 = vmatprep.subr.mxu1 %v676_v33 }
 0x47a   :  { %1123 = vmatpush3.msra.mxu1 %v676_v33 }
 0x47b   :  { %1124 = vmatprep.subr.mxu1 %v675_v34 }
 0x47c   :  { %1125 = vmatpush3.msra.mxu1 %v675_v34 }
 0x47d   :  { %1126 = vmatprep.subr.mxu1 %v674_v35 }
 0x47e   :  { %1127 = vmatpush3.msra.mxu1 %v674_v35 }
 0x47f   :  { %1128 = vmatprep.subr.mxu1 %v673_v36 }
 0x480   :  { %1129 = vmatpush3.msra.mxu1 %v673_v36 }
 0x481   :  { %1130 = vmatprep.subr.mxu1 %v672_v37 }
 0x482   :  { %1131 = vmatpush3.msra.mxu1 %v672_v37 }
 0x483   :  { %1132 = vmatprep.subr.mxu1 %v671_v38 }
 0x484   :  { %1133 = vmatpush3.msra.mxu1 %v671_v38 }
 0x485   :  { %1134 = vmatprep.subr.mxu1 %v670_v39 }
 0x486   :  { %1135 = vmatpush3.msra.mxu1 %v670_v39 }
 0x487   :  { %1136 = vmatprep.subr.mxu1 %v669_v40 }
 0x488   :  { %1137 = vmatpush3.msra.mxu1 %v669_v40 }
 0x489   :  { %1138 = vmatprep.subr.mxu1 %v668_v41 }
 0x48a   :  { %1139 = vmatpush3.msra.mxu1 %v668_v41 }
 0x48b   :  { %1140 = vmatprep.subr.mxu1 %v667_v42 }
 0x48c   :  { %1141 = vmatpush3.msra.mxu1 %v667_v42 }
 0x48d   :  { %1142 = vmatprep.subr.mxu1 %v666_v43 }
 0x48e   :  { %1143 = vmatpush3.msra.mxu1 %v666_v43 }
 0x48f   :  { %1144 = vmatprep.subr.mxu1 %v665_v44 }
 0x490   :  { %1145 = vmatpush3.msra.mxu1 %v665_v44 }
 0x491   :  { %1146 = vmatprep.subr.mxu1 %v664_v45 }
 0x492   :  { %1147 = vmatpush3.msra.mxu1 %v664_v45 }
 0x533   :  { %v1115_v58 = vpop.f32.mrf.mxu1 }
 0x534   :  { %v657_v59 = vadd.f32 %v1115_v58, %v882_v57 }
 0x535   :  { %v651_v60 = vpop.f32.mrf.mxu1 }
 0x536   :  { %v652_v61 = vadd.f32 %v882_v57, %v651_v60  ;;  %v661_v62 = vmul.f32 0.01, %v657_v59 }
 0x538   :  { %v660_v63 = vmul.f32 0.01, %v652_v61  ;;  %v663_v1 = vmax.f32 %v657_v59, %v661_v62 }
 0x53a   :  { %v662_v0 = vmax.f32 %v652_v61, %v660_v63 }
 0x53c   :  { %1148 = vmatprep.mubr.f32.mxu1 %v662_v0 }
 0x53d   :  { %1149 = vmatmul.mubr.f32.vlgmr.msra.gmra.mxu1 %v663_v1 }
 0x5fd   :  { %v1150_v8 = vpop.f32.mrf.mxu1 }
 0x5fe   :  { %v759_v9 = vadd.f32 %v1150_v8, %v885_v7 }
 0x5ff   :  { %v753_v10 = vpop.f32.mrf.mxu1 }
 0x600   :  { %v754_v11 = vadd.f32 %v885_v7, %v753_v10  ;;  %v763_v12 = vmul.f32 0.01, %v759_v9 }
 0x602   :  { %v762_v13 = vmul.f32 0.01, %v754_v11  ;;  %v765_v15 = vmax.f32 %v759_v9, %v763_v12 }
 0x604   :  { %v764_v14 = vmax.f32 %v754_v11, %v762_v13 }
 0x606   :  { %1183 = vmatprep.mubr.f32.mxu0 %v764_v14 }
 0x607   :  { %1184 = vmatmul.mubr.f32.vlgmr.msra.gmra.mxu0 %v765_v15 }
 0x6c7   :  { %v1185_v17 = vpop.f32.mrf.mxu0 }
 0x6c8   :  { %v861_v18 = vadd.f32 %v1185_v17, %v886_v16 }
 0x6c9   :  { %v855_v19 = vpop.f32.mrf.mxu0 }
 0x6ca   :  { %865 = vst [vmem:[%s1534_s15 + $0x8] sm:$0xff] %v861_v18  ;;  %v856_v20 = vadd.f32 %v886_v16, %v855_v19 }
 0x6cc   :  { %864 = vst [vmem:[%s1534_s15] sm:$0xff] %v856_v20 }
 0x6cd   :  { %870 = vsyncpa [#allocation3], 1 }
 0x6ce   :  { %871 = vsyncpa [#allocation5], 1 }
 0x6cf   :  { %872 = vsyncpa [#allocation8], 1 }
 0x6d0   :  { %873 = vsyncpa [#allocation11], 1 }

</bundles_post_ra>
